<compile_context>
chip_gen: v7x
topology: tpu7x:2x2x1
jax: 0.10.0
libtpu: 0.0.40
codegen_flags: <defaults>
</compile_context>

<pallas_src>
import functools
import math

import jax
import jax.numpy as jnp
from jax.experimental import pallas as pl
from jax.experimental.pallas import tpu as pltpu

_NEG_MASK = -1.0e12   # PyTorch: zero_vec = -1000000000000.0


def _elu(v):
    # ELU(alpha=1): x>0 -> x, else exp(x)-1 (min() keeps exp() off the overflow path)
    return jnp.where(v > 0, v, jnp.exp(jnp.minimum(v, 0.0)) - 1.0)


# ----------------------------------------------------------------------------
# Kernel 1: fused input projection  proj = x @ [W_0..W_{H-1} | W_h@a1 | W_h@a2]
# ----------------------------------------------------------------------------
def _proj_kernel(x_ref, w_ref, h_ref, f_ref, *, f_hid):
    p = jnp.dot(x_ref[...], w_ref[...], preferred_element_type=jnp.float32)
    h_ref[...] = p[:, :f_hid].astype(h_ref.dtype)   # bf16 aggregation operand
    f_ref[...] = p[:, f_hid:]                       # f32 attention logits [f1 | f2]


# ----------------------------------------------------------------------------
# Kernel 2: all heads (masked softmax attention + ELU) + output-layer projection
# ----------------------------------------------------------------------------
def _heads_kernel(f12_ref, f2t_ref, h_ref, adj_ref, wout_ref,
                  h2_ref, f12o_ref, cc_ref,
                  *, alpha, n_heads, n_hid, n_class):
    adj_mask = adj_ref[...] > 0                              # [tn, N] bool (int8 in HBM)
    for h in range(n_heads):                                 # tiny static unroll
        c0 = h * n_hid
        e = f12_ref[:, h:h + 1] + f2t_ref[h:h + 1, :]        # [tn, N] f32
        e = jnp.maximum(e, alpha * e)                        # LeakyReLU (0 <= alpha < 1)
        e = jnp.where(adj_mask, e, _NEG_MASK)                # adjacency mask
        e = e - jnp.max(e, axis=1, keepdims=True)
        ex = jnp.exp(e)                                      # unnormalised softmax
        s = jnp.sum(ex, axis=1, keepdims=True)               # [tn, 1]
        agg = jnp.dot(ex.astype(jnp.bfloat16),               # bf16 MXU, f32 acc
                      h_ref[:, c0:c0 + n_hid],
                      preferred_element_type=jnp.float32)    # [tn, n_hid]
        agg = agg * pl.reciprocal(s, approx=True)            # normalise AFTER aggregation
        cc_ref[:, c0:c0 + n_hid] = _elu(agg).astype(cc_ref.dtype)
    # output-layer projection is row-local -> fuse it here (concat never hits HBM)
    h2p = jnp.dot(cc_ref[...], wout_ref[...], preferred_element_type=jnp.float32)
    h2_ref[...] = h2p[:, :n_class].astype(h2_ref.dtype)      # bf16 aggregation operand
    f12o_ref[...] = h2p[:, n_class:]                         # f32 [f1_out | f2_out]


# ----------------------------------------------------------------------------
# Kernel 3: output attention + ELU + LayerNorm + log_softmax
# ----------------------------------------------------------------------------
def _out_kernel(f12o_ref, f2ot_ref, h2_ref, adj_ref, gamma_ref, beta_ref, out_ref,
                *, alpha, eps):
    adj_mask = adj_ref[...] > 0
    e = f12o_ref[:, 0:1] + f2ot_ref[...]                     # [tn, N]
    e = jnp.maximum(e, alpha * e)
    e = jnp.where(adj_mask, e, _NEG_MASK)
    e = e - jnp.max(e, axis=1, keepdims=True)
    ex = jnp.exp(e)
    s = jnp.sum(ex, axis=1, keepdims=True)
    y = jnp.dot(ex.astype(jnp.bfloat16), h2_ref[...],
                preferred_element_type=jnp.float32)          # [tn, C]
    y = _elu(y * pl.reciprocal(s, approx=True))
    # LayerNorm over last dim
    mu = jnp.mean(y, axis=1, keepdims=True)
    var = jnp.mean((y - mu) ** 2, axis=1, keepdims=True)
    yn = (y - mu) * jax.lax.rsqrt(var + eps) * gamma_ref[...] + beta_ref[...]
    # log_softmax over dim=1
    z = yn - jnp.max(yn, axis=1, keepdims=True)
    out_ref[...] = z - jnp.log(jnp.sum(jnp.exp(z), axis=1, keepdims=True))


# ----------------------------------------------------------------------------
# Wrapper
# ----------------------------------------------------------------------------
def _round_up(n, m):
    return ((n + m - 1) // m) * m


def _pick_row_tile(n_nodes, budget_bytes=24 << 20):
    """Largest row tile (multiple of 8) whose [tn, N]-scaling working set
    (2x int8 adj buffers + ~4 live f32 score temporaries ~= 18 B/elem) fits the
    budget, while keeping >= 2 tiles so the "parallel" grid can use both v7x TCs."""
    per_row = 18 * max(n_nodes, 1)
    cap = max(8, budget_bytes // per_row)
    half = _round_up(max((n_nodes + 1) // 2, 8), 8)
    t = min(1024, cap, half)
    return max(8, (t // 8) * 8)


def _vmem_limit_bytes(tn, n_pad, resident_bytes):
    est = 18 * tn * n_pad + resident_bytes + (4 << 20)
    # default scoped limit is 16/32 MiB; stay well under v7x's 64 MiB physical VMEM
    return int(min(max(est, 32 << 20), 50 << 20))


def gat_forward(x, adj, params, *, alpha, eps=1e-5, tile_rows=None):
    """Full GAT forward (eval mode: dropouts are identity)."""
    assert 0.0 <= alpha < 1.0, "max-based LeakyReLU requires 0 <= alpha < 1"
    n, f_in = x.shape
    heads = params["heads"]
    n_heads = len(heads)
    n_hid = heads[0]["W"].shape[1]
    f_hid = n_heads * n_hid
    w_out = params["out"]["W"]
    n_class = w_out.shape[1]

    gamma = params["ln_gamma"].reshape(1, -1).astype(jnp.float32)
    beta = params["ln_beta"].reshape(1, -1).astype(jnp.float32)
    # LayerNorm(n_feat) is applied to an [N, n_class] tensor -> requires equality.
    assert gamma.shape[1] == n_class, "LayerNorm(n_feat) requires n_class == n_feat"

    # Fold per-head attention vectors into the projection weights (once, in f32,
    # outside the kernels). Note: (x@W)@a vs x@(W@a) changes association order;
    # combined with bf16 MXU operands this differs slightly from PyTorch f32.
    w_stack = jnp.concatenate([h["W"] for h in heads], axis=1)           # [Fin, H*n_hid]
    wa1 = jnp.concatenate([h["W"] @ h["a1"] for h in heads], axis=1)     # [Fin, H]
    wa2 = jnp.concatenate([h["W"] @ h["a2"] for h in heads], axis=1)     # [Fin, H]
    w_all = jnp.concatenate([w_stack, wa1, wa2], axis=1).astype(jnp.bfloat16)
    k_all = f_hid + 2 * n_heads

    w_out_all = jnp.concatenate(
        [w_out, w_out @ params["out"]["a1"], w_out @ params["out"]["a2"]],
        axis=1).astype(jnp.bfloat16)                                      # [f_hid, C+2]

    # Row tiling (budget-aware) + padding to a multiple of the tile.
    tn = tile_rows if tile_rows is not None else _pick_row_tile(n)
    n_pad = _round_up(n, tn)
    n_tiles = n_pad // tn

    x_p = x.astype(jnp.bfloat16)
    adj_i8 = (adj > 0).astype(jnp.int8)
    if n_pad != n:
        x_p = jnp.pad(x_p, ((0, n_pad - n), (0, 0)))
        adj_i8 = jnp.pad(adj_i8, ((0, n_pad - n), (0, n_pad - n)))  # padded nodes: no edges

    resident = 2 * (n_pad * f_hid * 2 + n_pad * 2 * n_heads * 4 + n_pad * n_class * 2)
    cparams = pltpu.CompilerParams(
        dimension_semantics=("parallel",),
        vmem_limit_bytes=_vmem_limit_bytes(tn, n_pad, resident))

    # --- 1) fused input projection -------------------------------------------
    h_all, f12 = pl.pallas_call(
        functools.partial(_proj_kernel, f_hid=f_hid),
        out_shape=(jax.ShapeDtypeStruct((n_pad, f_hid), jnp.bfloat16),
                   jax.ShapeDtypeStruct((n_pad, 2 * n_heads), jnp.float32)),
        grid=(n_tiles,),
        in_specs=[pl.BlockSpec((tn, f_in), lambda i: (i, 0)),
                  pl.BlockSpec((f_in, k_all), lambda i: (0, 0))],
        out_specs=(pl.BlockSpec((tn, f_hid), lambda i: (i, 0)),
                   pl.BlockSpec((tn, 2 * n_heads), lambda i: (i, 0))),
        compiler_params=cparams,
    )(x_p, w_all)

    # hoisted f2 transpose (tiny layout plumbing, done once — not per tile/head)
    f2t = jnp.transpose(f12[:, n_heads:])                                 # [H, n_pad]

    # --- 2) multi-head attention + ELU + output-layer projection -------------
    h2_all, f12o = pl.pallas_call(
        functools.partial(_heads_kernel, alpha=float(alpha), n_heads=n_heads,
                          n_hid=n_hid, n_class=n_class),
        out_shape=(jax.ShapeDtypeStruct((n_pad, n_class), jnp.bfloat16),
                   jax.ShapeDtypeStruct((n_pad, 2), jnp.float32)),
        grid=(n_tiles,),
        in_specs=[pl.BlockSpec((tn, 2 * n_heads), lambda i: (i, 0)),   # f1|f2 (rows, f32)
                  pl.BlockSpec((n_heads, n_pad), lambda i: (0, 0)),    # f2^T (resident)
                  pl.BlockSpec((n_pad, f_hid), lambda i: (0, 0)),      # h (resident bf16)
                  pl.BlockSpec((tn, n_pad), lambda i: (i, 0)),         # adj row tile int8
                  pl.BlockSpec((f_hid, n_class + 2), lambda i: (0, 0))],
        out_specs=(pl.BlockSpec((tn, n_class), lambda i: (i, 0)),
                   pl.BlockSpec((tn, 2), lambda i: (i, 0))),
        scratch_shapes=[pltpu.VMEM((tn, f_hid), jnp.bfloat16)],         # per-tile concat
        compiler_params=cparams,
    )(f12, f2t, h_all, adj_i8, w_out_all)

    f2ot = jnp.transpose(f12o[:, 1:])                                    # [1, n_pad]

    # --- 3) output attention + ELU + LayerNorm + log_softmax -----------------
    out = pl.pallas_call(
        functools.partial(_out_kernel, alpha=float(alpha), eps=float(eps)),
        out_shape=jax.ShapeDtypeStruct((n_pad, n_class), jnp.float32),
        grid=(n_tiles,),
        in_specs=[pl.BlockSpec((tn, 2), lambda i: (i, 0)),             # f1_out (rows)
                  pl.BlockSpec((1, n_pad), lambda i: (0, 0)),          # f2_out^T (resident)
                  pl.BlockSpec((n_pad, n_class), lambda i: (0, 0)),    # h2 (resident bf16)
                  pl.BlockSpec((tn, n_pad), lambda i: (i, 0)),         # adj row tile int8
                  pl.BlockSpec((1, n_class), lambda i: (0, 0)),        # ln gamma
                  pl.BlockSpec((1, n_class), lambda i: (0, 0))],       # ln beta
        out_specs=pl.BlockSpec((tn, n_class), lambda i: (i, 0)),
        compiler_params=cparams,
    )(f12o, f2ot, h2_all, adj_i8, gamma, beta)

    return out[:n]


# ----------------------------------------------------------------------------
# Pure-JAX reference (mirrors the PyTorch module, eval mode) — for sanity check
# ----------------------------------------------------------------------------
def _elu_ref(v):
    return jnp.where(v > 0, v, jnp.expm1(v))


def _gal_ref(x, adj, W, a1, a2, alpha):
    h = x @ W
    e = (h @ a1) + (h @ a2).T
    e = jnp.where(e > 0, e, alpha * e)
    e = jnp.where(adj > 0, e, -1.0e12)
    attn = jax.nn.softmax(e, axis=1)
    return attn @ h


def gat_reference(x, adj, params, *, alpha, eps=1e-5):
    hs = [_elu_ref(_gal_ref(x, adj, h["W"], h["a1"], h["a2"], alpha))
          for h in params["heads"]]
    hcat = jnp.concatenate(hs, axis=1)
    o = params["out"]
    y = _elu_ref(_gal_ref(hcat, adj, o["W"], o["a1"], o["a2"], alpha))
    mu = jnp.mean(y, axis=1, keepdims=True)
    var = jnp.mean((y - mu) ** 2, axis=1, keepdims=True)
    yn = (y - mu) * jax.lax.rsqrt(var + eps) * params["ln_gamma"] + params["ln_beta"]
    return jax.nn.log_softmax(yn, axis=1)


# ----------------------------------------------------------------------------
# Deterministic parameter init (matches PyTorch __init__ shapes)
# ----------------------------------------------------------------------------
def xavier_uniform(key, shape, gain):
    fan_in, fan_out = shape[0], shape[1]
    bound = gain * math.sqrt(6.0 / (fan_in + fan_out))
    return jax.random.uniform(key, shape, jnp.float32, -bound, bound)


def init_gat_params(key, n_feat, n_hid, n_class, n_heads):
    gain = 1.414
    keys = jax.random.split(key, 2 * n_heads + 2)
    heads = []
    for i in range(n_heads):
        W = xavier_uniform(keys[2 * i], (n_feat, n_hid), gain)
        a = xavier_uniform(keys[2 * i + 1], (2 * n_hid, 1), gain)
        heads.append({"W": W, "a1": a[:n_hid, :], "a2": a[n_hid:, :]})
    W_out = xavier_uniform(keys[-2], (n_hid * n_heads, n_class), gain)
    a_out = xavier_uniform(keys[-1], (2 * n_class, 1), gain)
    return {
        "heads": heads,
        "out": {"W": W_out, "a1": a_out[:n_class, :], "a2": a_out[n_class:, :]},
        # LayerNorm(n_feat) default init: weight=1, bias=0 (requires n_class == n_feat)
        "ln_gamma": jnp.ones((1, n_feat), jnp.float32),
        "ln_beta": jnp.zeros((1, n_feat), jnp.float32),
    }


# ----------------------------------------------------------------------------
if __name__ == "__main__":
    N = 128           # number of graph nodes
    n_feat = 16       # input feature dim
    n_hid = 8         # hidden dim per head
    n_heads = 2
    n_class = n_feat  # LayerNorm(n_feat) on the output => n_class == n_feat
    alpha = 0.1       # LeakyReLU negative slope

    key = jax.random.PRNGKey(0)
    k_x, k_adj, k_p = jax.random.split(key, 3)

    x = jax.random.normal(k_x, (N, n_feat), jnp.float32)
    # sparse binary adjacency with self loops
    adj_rand = jax.random.uniform(k_adj, (N, N), jnp.float32)
    adj = (adj_rand > 0.8).astype(jnp.float32)
    adj = jnp.maximum(adj, jnp.eye(N, dtype=jnp.float32))

    params = init_gat_params(k_p, n_feat, n_hid, n_class, n_heads)

    out = gat_forward(x, adj, params, alpha=alpha)
    jax.block_until_ready(out)

    assert out.shape == (N, n_class)
    assert bool(jnp.all(jnp.isfinite(out)))
    # log_softmax self-consistency (exact, independent of bf16 matmuls)
    assert bool(jnp.allclose(jnp.sum(jnp.exp(out), axis=1), 1.0, atol=1e-3))
    # loose agreement with a pure-f32 reference (kernel uses bf16 MXU operands)
    ref = gat_reference(x, adj, params, alpha=alpha)
    assert float(jnp.max(jnp.abs(out - ref))) < 0.5
    print("KERNEL_OK")
</pallas_src>

<mosaic_0001>
module attributes {stable_mosaic.version = 11 : i64} {
  func.func @_proj_kernel(%arg0: i32, %arg1: memref<64x16xbf16, #tpu.memory_space<vmem>>, %arg2: memref<16x20xbf16, #tpu.memory_space<vmem>>, %arg3: memref<64x16xbf16, #tpu.memory_space<vmem>>, %arg4: memref<64x4xf32, #tpu.memory_space<vmem>>) attributes {dimension_semantics = [#tpu.dimension_semantics<parallel>], iteration_bounds = array<i64: 2>, scalar_prefetch = 0 : i64, scratch_operands = 0 : i64, tpu.core_type = #tpu.core_type<tc>, window_params = [{transform_indices = @transform_0, window_bounds = array<i64: 64, 16>}, {pipeline_mode = #tpu.pipeline_mode<synchronous>, transform_indices = @transform_1, window_bounds = array<i64: 16, 20>}, {transform_indices = @transform_2, window_bounds = array<i64: 64, 16>}, {transform_indices = @transform_3, window_bounds = array<i64: 64, 4>}]} {
    %c0 = arith.constant 0 : index
    %c0_0 = arith.constant 0 : index
    %0 = vector.load %arg1[%c0, %c0_0] : memref<64x16xbf16, #tpu.memory_space<vmem>>, vector<64x16xbf16>
    %c0_1 = arith.constant 0 : index
    %c0_2 = arith.constant 0 : index
    %1 = vector.load %arg2[%c0_1, %c0_2] : memref<16x20xbf16, #tpu.memory_space<vmem>>, vector<16x20xbf16>
    %cst = arith.constant dense<0.000000e+00> : vector<64x20xf32>
    %2 = tpu.matmul %0, %1, %cst {dimension_numbers = #tpu.dot_dimension_numbers<[1], [0], [0], [1], [0, 0, 1, 1], [], []>} : vector<64x16xbf16>, vector<16x20xbf16>, vector<64x20xf32> -> vector<64x20xf32>
    %3 = vector.extract_strided_slice %2 {offsets = [0, 0], sizes = [64, 16], strides = [1, 1]} : vector<64x20xf32> to vector<64x16xf32>
    %4 = arith.truncf %3 : vector<64x16xf32> to vector<64x16xbf16>
    %c0_3 = arith.constant 0 : index
    %c0_4 = arith.constant 0 : index
    %5 = vector.load %arg3[%c0_3, %c0_4] : memref<64x16xbf16, #tpu.memory_space<vmem>>, vector<64x16xbf16>
    tpu.vector_store %arg3[%c0_3, %c0_4], %4 {strides = array<i32>} : memref<64x16xbf16, #tpu.memory_space<vmem>>, vector<64x16xbf16>,
    %6 = vector.extract_strided_slice %2 {offsets = [0, 16], sizes = [64, 4], strides = [1, 1]} : vector<64x20xf32> to vector<64x4xf32>
    %c0_5 = arith.constant 0 : index
    %c0_6 = arith.constant 0 : index
    %7 = vector.load %arg4[%c0_5, %c0_6] : memref<64x4xf32, #tpu.memory_space<vmem>>, vector<64x4xf32>
    tpu.vector_store %arg4[%c0_5, %c0_6], %6 {strides = array<i32>} : memref<64x4xf32, #tpu.memory_space<vmem>>, vector<64x4xf32>,
    return
  }
  func.func @transform_0(%arg0: i32) -> (i32, i32) {
    %c0_i32 = arith.constant 0 : i32
    %c0_i32_0 = arith.constant 0 : i32
    return %arg0, %c0_i32 : i32, i32
  }
  func.func @transform_1(%arg0: i32) -> (i32, i32) {
    %c0_i32 = arith.constant 0 : i32
    %c0_i32_0 = arith.constant 0 : i32
    %c0_i32_1 = arith.constant 0 : i32
    return %c0_i32, %c0_i32_0 : i32, i32
  }
  func.func @transform_2(%arg0: i32) -> (i32, i32) {
    %c0_i32 = arith.constant 0 : i32
    %c0_i32_0 = arith.constant 0 : i32
    return %arg0, %c0_i32 : i32, i32
  }
  func.func @transform_3(%arg0: i32) -> (i32, i32) {
    %c0_i32 = arith.constant 0 : i32
    %c0_i32_0 = arith.constant 0 : i32
    return %arg0, %c0_i32 : i32, i32
  }
}

</mosaic_0001>

<bundles_post_ra>
// kernel: tpu_custom_call.1
= control target key start
LH: loop header
LB: loop body
LE: loop exit
PB: predicated region body
PF: predicated region fallthrough
CT: control target
= control target key end

     0   :  { %s573_s12 = smov 0   ;;  %s616_s0 = inlined_call_operand.vmem [shape: bf16[128,16], index: 0, kind: input, shape index: {}]   ;;  %s617_s1 = inlined_call_operand.vmem [shape: bf16[16,20], index: 1, kind: input, shape index: {}]   ;;  %s618_s2 = inlined_call_operand.vmem [shape: bf16[128,16], index: 2, kind: output, shape index: {0}]   ;;  %s619_s3 = inlined_call_operand.vmem [shape: f32[128,4], index: 3, kind: output, shape index: {1}]  }
   0x1 LB: > { %s475_s13 = sadd.s32 4294967295, %s550_s12   ;;  %p479_p0 = scmp.ge.s32.totalorder %s550_s12, 1  ;;  %s550_s12 = sphi %s573_s12, %s14_s12  }
   0x2   : > { %p141_p1 = scmp.lt.s32.totalorder %s550_s12, 3 }
   0x4   : > { %p142_p2 = pnand %p479_p0, %p141_p1 }
   0x5   : > { %v539_v0 = vld [vmem:[%s617_s1] sm:$0xff] (!%p142_p2)   ;;  %s480_s16 = sshll.u32 (!%p142_p2), %s475_s13, 3  ;;  %vm225_vm0 = vcmask (!%p142_p2), 130048   ;;  %vm335_vm1 = vcmask (!%p142_p2), 125952   ;;  %s552_s24 = smov (!%p142_p2), 112   ;;  %vm376_vm2 = vcmask (!%p142_p2), 31744  }
   0x6   : > { %145 = sbr.rel (%p142_p2) target bundleno = 359 (0x167), region = 28  ;;  %p171_p3 = scmp.lt.s32.totalorder (!%p142_p2), %s480_s16, 15  ;;  %518 = vmatprep.subr.bf16.mxu0 (!%p142_p2), %v539_v0  ;;  %528 = vmatprep.subr.bf16.mxu1 (!%p142_p2), %v539_v0 }
   0x7   : > { %519 = vmatpush3.bf16.msra.mxu0 (!%p142_p2), %v539_v0  ;;  %529 = vmatpush3.bf16.msra.mxu1 (!%p142_p2), %v539_v0 }
   0xd   : > { %s621_s16 = smov (!%p171_p3, %s480_s16), 15 }
   0xe   : > { %s481_s17 = sshll.u32 %s621_s16, 2  ;;  %s485_s25 = sshll.u32 %s621_s16, 3 }
   0xf   : > { %s174_s20 = scalar_lea.vmem %s616_s0, %s481_s17  ;;  %s180_s23 = scalar_lea.vmem %s618_s2, %s481_s17 }
  0x10   : > { %v540_v1 = vld [vmem:[%s174_s20] sm:$0xff]   ;;  %v541_v2 = vld [vmem:[%s174_s20 + $0x8] sm:$0xff]   ;;  %v542_v3 = vld [vmem:[%s174_s20 + $0x10] sm:$0xff]   ;;  %s186_s28 = scalar_lea.vmem %s619_s3, %s485_s25 }
  0x11   : > { %520 = vmatprep.mubr.msk.bf16.mxu0 %vm225_vm0, %v540_v1  ;;  %v543_v4 = vld [vmem:[%s174_s20 + $0x18] sm:$0xff]   ;;  %524 = vmatprep.mubr.msk.bf16.mxu1 %vm225_vm0, %v542_v3 }
  0x12   : > { %521 = vmatmul.mubr.msk.bf16.vlgmr.msra.gmra.mrb[0].mxu0 %vm225_vm0, %v541_v2  ;;  %525 = vmatmul.mubr.msk.bf16.vlgmr.msra.gmra.mrb[0].mxu1 %vm225_vm0, %v543_v4 }
  0xe5   : > { %v522_v5 = vpop.f32.mrb[0].mxu0  ;;  %v526_v8 = vpop.f32.mrb[0].mxu1 }
  0xe6   : > { %v507_v6 = vpack.c.bf16 %v522_v5, %v522_v5  ;;  %356 = vrot.lane.b32.xlu1 %v522_v5, %s552_s24  ;;  %v272_v7 = vpop.f32.mrb[1].mxu0  ;;  %v511_v11 = vpack.c.bf16 %v526_v8, %v526_v8  ;;  %v288_v12 = vpop.f32.mrb[1].mxu1 }
  0xe7   : > { %v505_v9 = vpack.c.bf16 %v272_v7, %v272_v7  ;;  %352 = vrot.lane.b32.xlu0 %v272_v7, %s552_s24  ;;  %v523_v10 = vpop.f32.mrb[2].mxu0  ;;  %v509_v15 = vpack.c.bf16 %v288_v12, %v288_v12  ;;  %v527_v17 = vpop.f32.mrb[2].mxu1 }
  0xe8   : > { %338 = vst.msk [vmem:[%s180_s23 + $0x8] sm:$0xf] %vm335_vm1, %v507_v6  ;;  %v508_v13 = vpack.c.bf16 %v523_v10, %v523_v10  ;;  %v275_v14 = vpop.f32.mrb[3].mxu0  ;;  %342 = vst.msk [vmem:[%s180_s23 + $0x18] sm:$0xf] %vm335_vm1, %v511_v11  ;;  %v512_v18 = vpack.c.bf16 %v527_v17, %v527_v17  ;;  %v291_v19 = vpop.f32.mrb[3].mxu1 }
  0xe9   : > { %336 = vst.msk [vmem:[%s180_s23] sm:$0xf] %vm335_vm1, %v505_v9  ;;  %v506_v16 = vpack.c.bf16 %v275_v14, %v275_v14  ;;  %340 = vst.msk [vmem:[%s180_s23 + $0x10] sm:$0xf] %vm335_vm1, %v509_v15  ;;  %v510_v20 = vpack.c.bf16 %v291_v19, %v291_v19 }
  0xea   : > { %339 = vst.msk [vmem:[%s180_s23 + $0xc] sm:$0xf] %vm335_vm1, %v508_v13  ;;  %358 = vrot.lane.b32.xlu1 %v523_v10, %s552_s24  ;;  %343 = vst.msk [vmem:[%s180_s23 + $0x1c] sm:$0xf] %vm335_vm1, %v512_v18 }
  0xeb   : > { %337 = vst.msk [vmem:[%s180_s23 + $0x4] sm:$0xf] %vm335_vm1, %v506_v16  ;;  %360 = vrot.lane.b32.xlu0 %v288_v12, %s552_s24  ;;  %341 = vst.msk [vmem:[%s180_s23 + $0x14] sm:$0xf] %vm335_vm1, %v510_v20 }
  0xee   : > { %362 = vrot.lane.b32.xlu1 %v291_v19, %s552_s24 }
  0xef   : > { %354 = vrot.lane.b32.xlu0 %v275_v14, %s552_s24 }
  0xf2   : > { %366 = vrot.lane.b32.xlu1 %v527_v17, %s552_s24 }
  0xf3   : > { %364 = vrot.lane.b32.xlu0 %v526_v8, %s552_s24 }
 0x158   : > { %v357_v21 = vpop.permute.xlu1 %356 }
 0x159   : > { %379 = vst.msk [vmem:[%s186_s28 + $0x10] sm:$0xff] %vm376_vm2, %v357_v21  ;;  %v353_v22 = vpop.permute.xlu0 %352 }
 0x15a   : > { %377 = vst.msk [vmem:[%s186_s28] sm:$0xff] %vm376_vm2, %v353_v22 }
 0x15c   : > { %v359_v23 = vpop.permute.xlu1 %358 }
 0x15d   : > { %380 = vst.msk [vmem:[%s186_s28 + $0x18] sm:$0xff] %vm376_vm2, %v359_v23  ;;  %v361_v24 = vpop.permute.xlu0 %360 }
 0x15e   : > { %381 = vst.msk [vmem:[%s186_s28 + $0x20] sm:$0xff] %vm376_vm2, %v361_v24 }
 0x160   : > { %v363_v25 = vpop.permute.xlu1 %362 }
 0x161   : > { %382 = vst.msk [vmem:[%s186_s28 + $0x28] sm:$0xff] %vm376_vm2, %v363_v25  ;;  %v355_v26 = vpop.permute.xlu0 %354 }
 0x162   : > { %378 = vst.msk [vmem:[%s186_s28 + $0x8] sm:$0xff] %vm376_vm2, %v355_v26 }
 0x164   : > { %v367_v27 = vpop.permute.xlu1 %366 }
 0x165   : > { %384 = vst.msk [vmem:[%s186_s28 + $0x38] sm:$0xff] %vm376_vm2, %v367_v27  ;;  %v365_v28 = vpop.permute.xlu0 %364 }
 0x166   : > { %383 = vst.msk [vmem:[%s186_s28 + $0x30] sm:$0xff] %vm376_vm2, %v365_v28 }
 0x167 PF: > { %s14_s12 = sadd.s32 1, %s550_s12  }
 0x168   : > { %p11_p4 = scmp.ge.s32.totalorder %s14_s12, 4  }
 0x16a   :  { %13 = sbr.rel (!%p11_p4) target bundleno = 1 (0x1), region = 70 }

</bundles_post_ra>
